<compile_context>
chip_gen: v7x
topology: tpu7x:2x2x1
jax: 0.10.0
libtpu: 0.0.40
codegen_flags: <defaults>
</compile_context>

<pallas_src>
import jax
import jax.numpy as jnp
from jax.experimental import pallas as pl
from jax.experimental.pallas import tpu as pltpu  # noqa: F401  (TPU backend)

EPS = 1e-5


def _bn_kernel(x_ref, gamma_ref, beta_ref, o_ref):
    # x_ref: (M, C) with M = N*H*W (sublanes) and C on lanes.
    # gamma_ref / beta_ref: (1, C), lane-dense.
    x = x_ref[...].astype(jnp.float32)
    inv_m = 1.0 / float(x.shape[0])

    # One pass over the slab: per-channel sum and sum of squares.
    # Reduction is over the sublane axis -> VPU adds, lane-dense result.
    s = jnp.sum(x, axis=0, keepdims=True)            # (1, C)
    ss = jnp.sum(x * x, axis=0, keepdims=True)       # (1, C)

    mean = s * inv_m                                 # (1, C)
    # Biased variance (as in PyTorch BN forward normalization), clamped >= 0
    # to guard against tiny negative values from cancellation.
    var = jnp.maximum(ss * inv_m - mean * mean, 0.0)  # (1, C)

    scale = gamma_ref[...].astype(jnp.float32) * jax.lax.rsqrt(var + EPS)
    shift = beta_ref[...].astype(jnp.float32) - mean * scale

    # Single FMA per element for normalize + affine; lane-dense store.
    o_ref[...] = (x * scale + shift).astype(o_ref.dtype)


def batchnorm2d_pallas(x_nchw, gamma, beta):
    """x_nchw: (N, C, H, W) float32; gamma, beta: (C,) float32."""
    n, c, h, w = x_nchw.shape
    m = n * h * w

    # NCHW -> (N*H*W, C): put channels on the lane axis (small XLA transpose).
    x2d = jnp.transpose(x_nchw, (0, 2, 3, 1)).reshape(m, c)
    gamma2d = gamma.reshape(1, c)
    beta2d = beta.reshape(1, c)

    out2d = pl.pallas_call(
        _bn_kernel,
        out_shape=jax.ShapeDtypeStruct((m, c), x_nchw.dtype),
        in_specs=[
            pl.BlockSpec((m, c), lambda: (0, 0)),
            pl.BlockSpec((1, c), lambda: (0, 0)),
            pl.BlockSpec((1, c), lambda: (0, 0)),
        ],
        out_specs=pl.BlockSpec((m, c), lambda: (0, 0)),
    )(x2d, gamma2d, beta2d)

    # (N*H*W, C) -> (N, C, H, W)
    return jnp.transpose(out2d.reshape(n, h, w, c), (0, 3, 1, 2))


def _reference(x_nchw, gamma, beta):
    mean = jnp.mean(x_nchw, axis=(0, 2, 3), keepdims=True)
    var = jnp.mean((x_nchw - mean) ** 2, axis=(0, 2, 3), keepdims=True)
    g = gamma.reshape(1, -1, 1, 1)
    b = beta.reshape(1, -1, 1, 1)
    return (x_nchw - mean) * jax.lax.rsqrt(var + EPS) * g + b


if __name__ == "__main__":
    key = jax.random.PRNGKey(0)
    k_x, k_g, k_b = jax.random.split(key, 3)

    # Shapes implied by the module: BatchNorm2d(888) on (1, 888, 7, 7).
    N, C, H, W = 1, 888, 7, 7
    x = jax.random.normal(k_x, (N, C, H, W), dtype=jnp.float32)

    # Perturbed affine parameters so the affine path is exercised.
    gamma = 1.0 + 0.1 * jax.random.normal(k_g, (C,), dtype=jnp.float32)
    beta = 0.1 * jax.random.normal(k_b, (C,), dtype=jnp.float32)

    bn = jax.jit(batchnorm2d_pallas)
    out = bn(x, gamma, beta)
    out = jax.block_until_ready(out)

    ref = _reference(x, gamma, beta)
    assert out.shape == (N, C, H, W)
    assert jnp.allclose(out, ref, atol=1e-4, rtol=1e-4)

    print("KERNEL_OK")
</pallas_src>

<mosaic_0001>
module attributes {stable_mosaic.version = 11 : i64} {
  func.func @_bn_kernel(%arg0: memref<49x888xf32, #tpu.memory_space<vmem>>, %arg1: memref<1x888xf32, #tpu.memory_space<vmem>>, %arg2: memref<1x888xf32, #tpu.memory_space<vmem>>, %arg3: memref<49x888xf32, #tpu.memory_space<vmem>>) attributes {dimension_semantics = [], scalar_prefetch = 0 : i64, scratch_operands = 0 : i64, tpu.core_type = #tpu.core_type<tc>} {
    %c0 = arith.constant 0 : index
    %c0_0 = arith.constant 0 : index
    %0 = vector.load %arg0[%c0, %c0_0] : memref<49x888xf32, #tpu.memory_space<vmem>>, vector<49x888xf32>
    %cst = arith.constant dense<0.000000e+00> : vector<888xf32>
    %1 = vector.multi_reduction <add>, %0, %cst [0] : vector<49x888xf32> to vector<888xf32>
    %2 = vector.shape_cast %1 : vector<888xf32> to vector<1x888xf32>
    %3 = arith.mulf %0, %0 : vector<49x888xf32>
    %cst_1 = arith.constant dense<0.000000e+00> : vector<888xf32>
    %4 = vector.multi_reduction <add>, %3, %cst_1 [0] : vector<49x888xf32> to vector<888xf32>
    %5 = vector.shape_cast %4 : vector<888xf32> to vector<1x888xf32>
    %cst_2 = arith.constant 0.0204081628 : f32
    %6 = vector.broadcast %cst_2 : f32 to vector<1x888xf32>
    %7 = arith.mulf %2, %6 : vector<1x888xf32>
    %cst_3 = arith.constant 0.0204081628 : f32
    %8 = vector.broadcast %cst_3 : f32 to vector<1x888xf32>
    %9 = arith.mulf %5, %8 : vector<1x888xf32>
    %10 = arith.mulf %7, %7 : vector<1x888xf32>
    %11 = arith.subf %9, %10 : vector<1x888xf32>
    %cst_4 = arith.constant 0.000000e+00 : f32
    %12 = vector.broadcast %cst_4 : f32 to vector<1x888xf32>
    %13 = arith.maximumf %11, %12 : vector<1x888xf32>
    %c0_5 = arith.constant 0 : index
    %c0_6 = arith.constant 0 : index
    %14 = vector.load %arg1[%c0_5, %c0_6] : memref<1x888xf32, #tpu.memory_space<vmem>>, vector<1x888xf32>
    %cst_7 = arith.constant 9.99999974E-6 : f32
    %15 = vector.broadcast %cst_7 : f32 to vector<1x888xf32>
    %16 = arith.addf %13, %15 : vector<1x888xf32>
    %17 = math.rsqrt %16 : vector<1x888xf32>
    %18 = arith.mulf %14, %17 : vector<1x888xf32>
    %c0_8 = arith.constant 0 : index
    %c0_9 = arith.constant 0 : index
    %19 = vector.load %arg2[%c0_8, %c0_9] : memref<1x888xf32, #tpu.memory_space<vmem>>, vector<1x888xf32>
    %20 = arith.mulf %7, %18 : vector<1x888xf32>
    %21 = arith.subf %19, %20 : vector<1x888xf32>
    %22 = vector.broadcast %18 : vector<1x888xf32> to vector<49x888xf32>
    %23 = arith.mulf %0, %22 : vector<49x888xf32>
    %24 = vector.broadcast %21 : vector<1x888xf32> to vector<49x888xf32>
    %25 = arith.addf %23, %24 : vector<49x888xf32>
    %c0_10 = arith.constant 0 : index
    %c0_11 = arith.constant 0 : index
    %26 = vector.load %arg3[%c0_10, %c0_11] : memref<49x888xf32, #tpu.memory_space<vmem>>, vector<49x888xf32>
    tpu.vector_store %arg3[%c0_10, %c0_11], %25 {strides = array<i32>} : memref<49x888xf32, #tpu.memory_space<vmem>>, vector<49x888xf32>,
    return
  }
}

</mosaic_0001>

<bundles_post_ra>
// kernel: batchnorm2d_pallas.1
= control target key start
LH: loop header
LB: loop body
LE: loop exit
PB: predicated region body
PF: predicated region fallthrough
CT: control target
= control target key end

     0   :  { %vm142_vm0 = vcmask 982016   ;;  %vm68_vm1 = vcmask 1040384   ;;  %vm154_vm2 = vcmask 974848   ;;  %s1764_s0 = inlined_call_operand.vmem [shape: f32[49,888], index: 0, kind: input, shape index: {}]   ;;  %s1765_s1 = inlined_call_operand.vmem [shape: f32[1,888], index: 1, kind: input, shape index: {}]   ;;  %s1766_s2 = inlined_call_operand.vmem [shape: f32[1,888], index: 2, kind: input, shape index: {}]   ;;  %s1767_s3 = inlined_call_operand.vmem [shape: f32[49,888], index: 3, kind: output, shape index: {}]  }
   0x1   :  { %v743_v0 = vld [vmem:[%s1764_s0] sm:$0xff]  ;;  %v748_v1 = vld [vmem:[%s1764_s0 + $0x8] sm:$0xff]  ;;  %v753_v2 = vld [vmem:[%s1764_s0 + $0x10] sm:$0xff] }
   0x2   :  { %1814 = vst [vmem:[#allocation2_spill] sm:$0xff] %v743_v0  ;;  %1815 = vst [vmem:[#allocation3_spill] sm:$0xff] %v748_v1  ;;  %v758_v3 = vld [vmem:[%s1764_s0 + $0x18] sm:$0xff]  ;;  %v763_v4 = vld [vmem:[%s1764_s0 + $0x20] sm:$0xff]  ;;  %v772_v6 = vmul.f32 %v743_v0, %v743_v0  ;;  %v776_v7 = vmul.f32 %v748_v1, %v748_v1  ;;  %v795_v11 = vmul.f32 %v753_v2, %v753_v2 }
   0x3   :  { %1816 = vst [vmem:[#allocation4_spill] sm:$0xff] %v753_v2  ;;  %1817 = vst [vmem:[#allocation5_spill] sm:$0xff] %v758_v3  ;;  %v768_v5 = vld [vmem:[%s1764_s0 + $0x28] sm:$0xff]  ;;  %v781_v8 = vld [vmem:[%s1764_s0 + $0x30] sm:$0xff]  ;;  %v799_v12 = vmul.f32 %v758_v3, %v758_v3  ;;  %v803_v13 = vmul.f32 %v763_v4, %v763_v4 }
   0x4   :  { %1818 = vst [vmem:[#allocation6_spill] sm:$0xff] %v763_v4  ;;  %1819 = vst [vmem:[#allocation7_spill] sm:$0xff] %v768_v5  ;;  %v786_v9 = vld [vmem:[%s1764_s0 + $0x38] sm:$0xff]  ;;  %v791_v10 = vld [vmem:[%s1764_s0 + $0x40] sm:$0xff]  ;;  %v807_v14 = vmul.f32 %v768_v5, %v768_v5  ;;  %v143_v20 = vsel %vm142_vm0, %v781_v8, 0.0  ;;  %v832_v21 = vmul.f32 %v781_v8, %v781_v8 }
   0x5   :  { %1820 = vst [vmem:[#allocation8_spill] sm:$0xff] %v781_v8  ;;  %1821 = vst [vmem:[#allocation9_spill] sm:$0xff] %v786_v9  ;;  %v812_v15 = vld [vmem:[%s1764_s0 + $0x48] sm:$0xff]  ;;  %v817_v16 = vld [vmem:[%s1764_s0 + $0x50] sm:$0xff]  ;;  %v63_v18 = vadd.f32 %v786_v9, %v743_v0  ;;  %v77_v19 = vadd.f32 %v791_v10, %v748_v1  ;;  %v857_v28 = vmul.f32 %v786_v9, %v786_v9 }
   0x6   :  { %1822 = vst [vmem:[#allocation10_spill] sm:$0xff] %v791_v10  ;;  %1823 = vst [vmem:[#allocation11_spill] sm:$0xff] %v799_v12  ;;  %v822_v17 = vld [vmem:[%s1764_s0 + $0x58] sm:$0xff]  ;;  %v837_v22 = vld [vmem:[%s1764_s0 + $0x60] sm:$0xff]  ;;  %v90_v25 = vadd.f32 %v812_v15, %v753_v2  ;;  %v103_v26 = vadd.f32 %v817_v16, %v758_v3  ;;  %v881_v35 = vmul.f32 %v791_v10, %v791_v10 }
   0x7   :  { %1824 = vst [vmem:[#allocation12_spill] sm:$0xff] %v803_v13  ;;  %1825 = vst [vmem:[#allocation13_spill] sm:$0xff] %v807_v14  ;;  %v842_v23 = vld [vmem:[%s1764_s0 + $0x68] sm:$0xff]  ;;  %v847_v24 = vld [vmem:[%s1764_s0 + $0x70] sm:$0xff]  ;;  %v116_v27 = vadd.f32 %v822_v17, %v763_v4  ;;  %v129_v33 = vadd.f32 %v837_v22, %v768_v5  ;;  %v922_v49 = vmul.f32 %v812_v15, %v812_v15 }
   0x8   :  { %1826 = vst [vmem:[#allocation14_spill] sm:$0xff] %v812_v15  ;;  %1827 = vst [vmem:[#allocation15_spill] sm:$0xff] %v817_v16  ;;  %v862_v29 = vld [vmem:[%s1764_s0 + $0x78] sm:$0xff]  ;;  %v867_v30 = vld [vmem:[%s1764_s0 + $0x80] sm:$0xff]  ;;  %v64_v32 = vadd.f32 %v63_v18, %v847_v24  ;;  %v144_v34 = vsel %vm142_vm0, %v842_v23, 0.0  ;;  %v962_v63 = vmul.f32 %v817_v16, %v817_v16 }
   0x9   :  { %1828 = vst [vmem:[#allocation16_spill] sm:$0xff] %v822_v17  ;;  %1829 = vst [vmem:[#allocation17_spill] sm:$0xff] %v832_v21  ;;  %v872_v31 = vld [vmem:[%s1764_s0 + $0x88] sm:$0xff]  ;;  %v886_v36 = vld [vmem:[%s1764_s0 + $0x90] sm:$0xff]  ;;  %v78_v39 = vadd.f32 %v77_v19, %v862_v29  ;;  %v91_v40 = vadd.f32 %v90_v25, %v867_v30  ;;  %v145_v42 = vadd.f32 %v144_v34, %v143_v20 }
   0xa   :  { %1830 = vst [vmem:[#allocation18_spill] sm:$0xff] %v837_v22  ;;  %1831 = vst [vmem:[#allocation19_spill] sm:$0xff] %v842_v23  ;;  %v891_v37 = vld [vmem:[%s1764_s0 + $0x98] sm:$0xff]  ;;  %v896_v38 = vld [vmem:[%s1764_s0 + $0xa0] sm:$0xff]  ;;  %v104_v41 = vadd.f32 %v103_v26, %v872_v31  ;;  %v117_v46 = vadd.f32 %v116_v27, %v886_v36  ;;  %v1100_v5 = vmul.f32 %v886_v36, %v886_v36 }
   0xb   :  { %1832 = vst [vmem:[#allocation20_spill] sm:$0xff] %v847_v24  ;;  %1833 = vst [vmem:[#allocation21_spill] sm:$0xff] %v862_v29  ;;  %v904_v43 = vld [vmem:[%s1764_s0 + $0xa8] sm:$0xff]  ;;  %v909_v44 = vld [vmem:[%s1764_s0 + $0xb0] sm:$0xff]  ;;  %v130_v47 = vadd.f32 %v129_v33, %v891_v37  ;;  %v146_v48 = vsel %vm142_vm0, %v896_v38, 0.0 }
   0xc   :  { %1834 = vst [vmem:[#allocation22_spill] sm:$0xff] %v867_v30  ;;  %1835 = vst [vmem:[#allocation23_spill] sm:$0xff] %v872_v31  ;;  %v914_v45 = vld [vmem:[%s1764_s0 + $0xb8] sm:$0xff]  ;;  %v927_v50 = vld [vmem:[%s1764_s0 + $0xc0] sm:$0xff]  ;;  %v65_v53 = vadd.f32 %v64_v32, %v904_v43  ;;  %v79_v54 = vadd.f32 %v78_v39, %v909_v44  ;;  %v147_v56 = vadd.f32 %v146_v48, %v145_v42 }
   0xd   :  { %1836 = vst [vmem:[#allocation24_spill] sm:$0xff] %v886_v36  ;;  %1837 = vst [vmem:[#allocation25_spill] sm:$0xff] %v896_v38  ;;  %v932_v51 = vld [vmem:[%s1764_s0 + $0xc8] sm:$0xff]  ;;  %v937_v52 = vld [vmem:[%s1764_s0 + $0xd0] sm:$0xff]  ;;  %v92_v55 = vadd.f32 %v91_v40, %v914_v45  ;;  %v105_v60 = vadd.f32 %v104_v41, %v927_v50  ;;  %v985_v32 = vmul.f32 %v822_v17, %v822_v17 }
   0xe   :  { %1838 = vst [vmem:[#allocation26_spill] sm:$0xff] %v904_v43  ;;  %1839 = vst [vmem:[#allocation27_spill] sm:$0xff] %v922_v49  ;;  %v945_v57 = vld [vmem:[%s1764_s0 + $0xd8] sm:$0xff]  ;;  %v950_v58 = vld [vmem:[%s1764_s0 + $0xe0] sm:$0xff]  ;;  %v118_v61 = vadd.f32 %v117_v46, %v932_v51  ;;  %v131_v62 = vadd.f32 %v130_v47, %v937_v52 }
   0xf   :  { %1840 = vst [vmem:[#allocation28_spill] sm:$0xff] %v932_v51  ;;  %1841 = vst [vmem:[#allocation29_spill] sm:$0xff] %v937_v52  ;;  %v955_v59 = vld [vmem:[%s1764_s0 + $0xe8] sm:$0xff]  ;;  %v967_v18 = vld [vmem:[%s1764_s0 + $0xf0] sm:$0xff]  ;;  %v66_v25 = vadd.f32 %v65_v53, %v950_v58  ;;  %v148_v27 = vsel %vm142_vm0, %v945_v57, 0.0 }
  0x10   :  { %1842 = vst [vmem:[#allocation30_spill] sm:$0xff] %v945_v57  ;;  %1843 = vst [vmem:[#allocation31_spill] sm:$0xff] %v950_v58  ;;  %v972_v19 = vld [vmem:[%s1764_s0 + $0xf8] sm:$0xff]  ;;  %v977_v20 = vld [vmem:[%s1764_s0 + $0x100] sm:$0xff]  ;;  %v80_v26 = vadd.f32 %v79_v54, %v955_v59  ;;  %v93_v40 = vadd.f32 %v92_v55, %v967_v18  ;;  %v149_v46 = vadd.f32 %v148_v27, %v147_v56 }
  0x11   :  { %1844 = vst [vmem:[#allocation32_spill] sm:$0xff] %v955_v59  ;;  %1845 = vst [vmem:[#allocation33_spill] sm:$0xff] %v962_v63  ;;  %v990_v33 = vld [vmem:[%s1764_s0 + $0x108] sm:$0xff]  ;;  %v995_v34 = vld [vmem:[%s1764_s0 + $0x110] sm:$0xff]  ;;  %v106_v41 = vadd.f32 %v105_v60, %v972_v19  ;;  %v119_v42 = vadd.f32 %v118_v61, %v977_v20  ;;  %v1026_v60 = vmul.f32 %v837_v22, %v837_v22 }
  0x12   :  { %1846 = vst [vmem:[#allocation34_spill] sm:$0xff] %v967_v18  ;;  %1847 = vst [vmem:[#allocation35_spill] sm:$0xff] %v972_v19  ;;  %v1000_v39 = vld [vmem:[%s1764_s0 + $0x118] sm:$0xff]  ;;  %v1008_v47 = vld [vmem:[%s1764_s0 + $0x120] sm:$0xff]  ;;  %v132_v55 = vadd.f32 %v131_v62, %v990_v33  ;;  %v150_v56 = vsel %vm142_vm0, %v995_v34, 0.0  ;;  %v1129_v63 = vmul.f32 %v896_v38, %v896_v38 }
  0x13   :  { %1848 = vst [vmem:[#allocation36_spill] sm:$0xff] %v977_v20  ;;  %1849 = vst [vmem:[#allocation37_spill] sm:$0xff] %v985_v32  ;;  %v1013_v48 = vld [vmem:[%s1764_s0 + $0x128] sm:$0xff]  ;;  %v1018_v53 = vld [vmem:[%s1764_s0 + $0x130] sm:$0xff]  ;;  %v67_v54 = vadd.f32 %v66_v25, %v1000_v39  ;;  %v81_v25 = vadd.f32 %v80_v26, %v1008_v47  ;;  %v151_v16 = vadd.f32 %v150_v56, %v149_v46 }
  0x14   :  { %1850 = vst [vmem:[#allocation38_spill] sm:$0xff] %v990_v33  ;;  %1851 = vst [vmem:[#allocation39_spill] sm:$0xff] %v995_v34  ;;  %v1031_v61 = vld [vmem:[%s1764_s0 + $0x138] sm:$0xff]  ;;  %v1036_v27 = vld [vmem:[%s1764_s0 + $0x140] sm:$0xff]  ;;  %v94_v22 = vadd.f32 %v93_v40, %v1013_v48  ;;  %v107_v17 = vadd.f32 %v106_v41, %v1018_v53  ;;  %v1065_v41 = vmul.f32 %v842_v23, %v842_v23 }
  0x15   :  { %1852 = vst [vmem:[#allocation40_spill] sm:$0xff] %v1000_v39  ;;  %1853 = vst [vmem:[#allocation41_spill] sm:$0xff] %v1008_v47  ;;  %v1041_v62 = vld [vmem:[%s1764_s0 + $0x148] sm:$0xff]  ;;  %v1049_v15 = vld [vmem:[%s1764_s0 + $0x150] sm:$0x1]  ;;  %v120_v26 = vadd.f32 %v119_v42, %v1031_v61  ;;  %v133_v40 = vadd.f32 %v132_v55, %v1036_v27  ;;  %v1069_v46 = vmul.f32 %v847_v24, %v847_v24 }
  0x16   :  { %1854 = vst [vmem:[#allocation42_spill] sm:$0xff] %v1013_v48  ;;  %1855 = vst [vmem:[#allocation43_spill] sm:$0xff] %v1018_v53  ;;  %v1054_v10 = vld [vmem:[%s1764_s0 + $0x158] sm:$0x1]  ;;  %v1059_v9 = vld [vmem:[%s1764_s0 + $0x160] sm:$0x1]  ;;  %v1088_v55 = vmul.f32 %v862_v29, %v862_v29  ;;  %v1092_v24 = vmul.f32 %v867_v30, %v867_v30  ;;  %v1096_v23 = vmul.f32 %v872_v31, %v872_v31 }
  0x17   :  { %1856 = vst [vmem:[#allocation44_spill] sm:$0xff] %v1026_v60  ;;  %1857 = vst [vmem:[#allocation45_spill] sm:$0xff] %v1031_v61  ;;  %v1074_v56 = vld [vmem:[%s1764_s0 + $0x168] sm:$0x1]  ;;  %v1079_v8 = vld [vmem:[%s1764_s0 + $0x170] sm:$0x1] }
  0x18   :  { %1858 = vst [vmem:[#allocation46_spill] sm:$0xff] %v1036_v27  ;;  %1859 = vst [vmem:[#allocation47_spill] sm:$0xff] %v1041_v62  ;;  %v1084_v42 = vld [vmem:[%s1764_s0 + $0x178] sm:$0x1]  ;;  %v1105_v4 = vld [vmem:[%s1764_s0 + $0x180] sm:$0x1] }
  0x19   :  { %1860 = vst [vmem:[#allocation48_spill] sm:$0xff] %v1049_v15  ;;  %1861 = vst [vmem:[#allocation49_spill] sm:$0xff] %v1054_v10  ;;  %v69_v29 = vsel %vm68_vm1, %v1049_v15, 0.0  ;;  %v82_v30 = vsel %vm68_vm1, %v1054_v10, 0.0  ;;  %v95_v3 = vsel %vm68_vm1, %v1059_v9, 0.0  ;;  %v108_v31 = vsel %vm68_vm1, %v1074_v56, 0.0 }
  0x1a   :  { %1862 = vst [vmem:[#allocation50_spill] sm:$0xff] %v1059_v9  ;;  %1863 = vst [vmem:[#allocation51_spill] sm:$0xff] %v1065_v41  ;;  %v70_v2 = vadd.f32 %v69_v29, %v67_v54  ;;  %v83_v36 = vadd.f32 %v82_v30, %v81_v25  ;;  %v96_v1 = vadd.f32 %v95_v3, %v94_v22  ;;  %v121_v41 = vsel %vm68_vm1, %v1079_v8, 0.0 }
  0x1b   :  { %1864 = vst [vmem:[#allocation52_spill] sm:$0xff] %v1069_v46  ;;  %1865 = vst [vmem:[#allocation53_spill] sm:$0xff] %v1074_v56  ;;  %v109_v0 = vadd.f32 %v108_v31, %v107_v17  ;;  %v134_v21 = vsel %vm68_vm1, %v1084_v42, 0.0  ;;  %v155_v60 = vsel %vm154_vm2, %v1105_v4, 0.0  ;;  %v122_v29 = vadd.f32 %v121_v41, %v120_v26 }
  0x1c   :  { %1866 = vst [vmem:[#allocation54_spill] sm:$0xff] %v1079_v8  ;;  %1867 = vst [vmem:[#allocation55_spill] sm:$0xff] %v1084_v42  ;;  %v71_v14 = vrot.slane %v70_v2, 4  ;;  %v135_v30 = vadd.f32 %v134_v21, %v133_v40  ;;  %v1125_v17 = vmul.f32 %v891_v37, %v891_v37 }
  0x1d   :  { %1868 = vst [vmem:[#allocation56_spill] sm:$0xff] %v1088_v55  ;;  %1869 = vst [vmem:[#allocation57_spill] sm:$0xff] %v1092_v24  ;;  %v97_v24 = vrot.slane %v96_v1, 4  ;;  %v110_v32 = vrot.slane %v109_v0, 4  ;;  %v123_v13 = vrot.slane %v122_v29, 4 }
  0x1e   :  { %1870 = vst [vmem:[#allocation58_spill] sm:$0xff] %v1096_v23  ;;  %1871 = vst [vmem:[#allocation59_spill] sm:$0xff] %v1100_v5  ;;  %v152_v5 = vsel %vm142_vm0, %v1041_v62, 0.0  ;;  %v84_v23 = vrot.slane %v83_v36, 4  ;;  %v72_v22 = vadd.f32 %v71_v14, %v70_v2  ;;  %v136_v55 = vrot.slane %v135_v30, 4 }
  0x1f   :  { %1872 = vst [vmem:[#allocation60_spill] sm:$0xff] %v1105_v4  ;;  %v153_v3 = vadd.f32 %v152_v5, %v151_v16  ;;  %v98_v54 = vadd.f32 %v97_v24, %v96_v1  ;;  %v111_v25 = vadd.f32 %v110_v32, %v109_v0  ;;  %v124_v5 = vadd.f32 %v123_v13, %v122_v29 }
  0x20   :  { %v85_v31 = vadd.f32 %v84_v23, %v83_v36  ;;  %v73_v12 = vrot.slane %v72_v22, 2  ;;  %v137_v16 = vadd.f32 %v136_v55, %v135_v30  ;;  %v1133_v2 = vmul.f32 %v904_v43, %v904_v43 }
  0x21   :  { %v156_v46 = vadd.f32 %v155_v60, %v153_v3  ;;  %v99_v26 = vrot.slane %v98_v54, 2  ;;  %v112_v21 = vrot.slane %v111_v25, 2  ;;  %v125_v24 = vrot.slane %v124_v5, 2 }
  0x22   :  { %v86_v49 = vrot.slane %v85_v31, 2  ;;  %v74_v1 = vadd.f32 %v73_v12, %v72_v22  ;;  %v138_v36 = vrot.slane %v137_v16, 2  ;;  %v185_v60 = vmul.f32 %v909_v44, %v909_v44 }
  0x23   :  { %v157_v40 = vrot.slane %v156_v46, 4  ;;  %v100_v14 = vadd.f32 %v99_v26, %v98_v54  ;;  %v113_v23 = vadd.f32 %v112_v21, %v111_v25  ;;  %v126_v55 = vadd.f32 %v125_v24, %v124_v5 }
  0x24   :  { %v87_v0 = vadd.f32 %v86_v49, %v85_v31  ;;  %v75_v41 = vrot.slane %v74_v1, 1  ;;  %v139_v29 = vadd.f32 %v138_v36, %v137_v16  ;;  %v186_v43 = vmul.f32 %v914_v45, %v914_v45 }
  0x25   :  { %v158_v32 = vadd.f32 %v157_v40, %v156_v46  ;;  %v101_v38 = vrot.slane %v100_v14, 1  ;;  %v114_v13 = vrot.slane %v113_v23, 1  ;;  %v127_v31 = vrot.slane %v126_v55, 1 }
  0x26   :  { %v88_v3 = vrot.slane %v87_v0, 1  ;;  %v1139_v12 = vadd.f32 %v75_v41, %v74_v1  ;;  %v140_v54 = vrot.slane %v139_v29, 1  ;;  %v187_v26 = vmul.f32 %v927_v50, %v927_v50 }
  0x27   :  { %v159_v30 = vrot.slane %v158_v32, 2  ;;  %v1143_v22 = vadd.f32 %v101_v38, %v100_v14  ;;  %v1145_v46 = vadd.f32 %v114_v13, %v113_v23  ;;  %v188_v21 = vmul.f32 %v932_v51, %v932_v51 }
  0x28   :  { %v1141_v49 = vadd.f32 %v88_v3, %v87_v0  ;;  %v189_v5 = vmul.f32 %v937_v52, %v937_v52  ;;  %v1155_v16 = vmul.f32 %v945_v57, %v945_v57  ;;  %v191_v38 = vmul.f32 %v950_v58, %v950_v58  ;;  %v1881_v57 = vld [vmem:[#allocation58_spill] sm:$0xff] }
  0x29   :  { %v160_v25 = vadd.f32 %v159_v30, %v158_v32  ;;  %v1159_v40 = vadd.f32 %v127_v31, %v126_v55  ;;  %v1161_v1 = vadd.f32 %v140_v54, %v139_v29  ;;  %v192_v14 = vmul.f32 %v955_v59, %v955_v59  ;;  %v1879_v59 = vld [vmem:[#allocation37_spill] sm:$0xff] }
  0x2a   :  { %v193_v23 = vmul.f32 %v967_v18, %v967_v18  ;;  %v194_v24 = vmul.f32 %v972_v19, %v972_v19  ;;  %v195_v36 = vmul.f32 %v977_v20, %v977_v20  ;;  %v196_v32 = vmul.f32 %v990_v33, %v990_v33  ;;  %v1875_v33 = vld [vmem:[#allocation33_spill] sm:$0xff]  ;;  %v1876_v19 = vld [vmem:[#allocation52_spill] sm:$0xff] }
  0x2b   :  { %v161_v0 = vrot.slane %v160_v25, 1  ;;  %v197_v3 = vmul.f32 %v995_v34, %v995_v34  ;;  %v198_v13 = vmul.f32 %v1000_v39, %v1000_v39  ;;  %v199_v55 = vmul.f32 %v1008_v47, %v1008_v47  ;;  %v1873_v39 = vld [vmem:[#allocation27_spill] sm:$0xff] }
  0x2c   :  { %v200_v29 = vmul.f32 %v1013_v48, %v1013_v48  ;;  %v201_v30 = vmul.f32 %v1018_v53, %v1018_v53  ;;  %v202_v31 = vmul.f32 %v1031_v61, %v1031_v61  ;;  %v203_v54 = vmul.f32 %v1036_v27, %v1036_v27 }
  0x2d   :  { %v1173_v41 = vadd.f32 %v161_v0, %v160_v25  ;;  %v1191_v25 = vmul.f32 %v1041_v62, %v1041_v62  ;;  %v205_v0 = vmul.f32 %v1049_v15, %v1049_v15  ;;  %v206_v47 = vmul.f32 %v1054_v10, %v1054_v10 }
  0x2e   :  { %v207_v48 = vmul.f32 %v1059_v9, %v1059_v9  ;;  %v208_v53 = vmul.f32 %v1074_v56, %v1074_v56  ;;  %v209_v61 = vmul.f32 %v1079_v8, %v1079_v8  ;;  %v210_v27 = vmul.f32 %v1084_v42, %v1084_v42  ;;  %v1874_v42 = vld [vmem:[#allocation11_spill] sm:$0xff] }
  0x2f   :  { %v1207_v62 = vmul.f32 %v1105_v4, %v1105_v4  ;;  %v212_v15 = vadd.f32 %v857_v28, %v772_v6  ;;  %v217_v10 = vsel %vm68_vm1, %v205_v0, 0.0  ;;  %v225_v9 = vadd.f32 %v881_v35, %v776_v7  ;;  %v1877_v6 = vld [vmem:[#allocation56_spill] sm:$0xff]  ;;  %v1880_v35 = vld [vmem:[#allocation57_spill] sm:$0xff] }
  0x30   :  { %v230_v56 = vsel %vm68_vm1, %v206_v47, 0.0  ;;  %v238_v8 = vadd.f32 %v1873_v39, %v795_v11  ;;  %v243_v34 = vsel %vm68_vm1, %v207_v48, 0.0  ;;  %v251_v20 = vadd.f32 %v1875_v33, %v1874_v42  ;;  %v1878_v0 = vld [vmem:[#allocation12_spill] sm:$0xff]  ;;  %v1882_v39 = vld [vmem:[#allocation13_spill] sm:$0xff] }
  0x31   :  { %v256_v4 = vsel %vm68_vm1, %v208_v53, 0.0  ;;  %v213_v18 = vadd.f32 %v212_v15, %v1876_v19  ;;  %v226_v28 = vadd.f32 %v225_v9, %v1877_v6  ;;  %v264_v58 = vadd.f32 %v1879_v59, %v1878_v0  ;;  %v1883_v48 = vld [vmem:[#allocation44_spill] sm:$0xff]  ;;  %v1884_v15 = vld [vmem:[#allocation59_spill] sm:$0xff]  ;;  %v1885_v9 = vld [vmem:[#allocation17_spill] sm:$0xff] }
  0x32   :  { %v269_v7 = vsel %vm68_vm1, %v209_v61, 0.0  ;;  %v239_v47 = vadd.f32 %v238_v8, %v1880_v35  ;;  %v252_v11 = vadd.f32 %v251_v20, %v1881_v57  ;;  %v277_v52 = vadd.f32 %v1883_v48, %v1882_v39  ;;  %v1886_v8 = vld [vmem:[#allocation51_spill] sm:$0xff] }
  0x33   :  { %v282_v33 = vsel %vm68_vm1, %v210_v27, 0.0  ;;  %v214_v53 = vadd.f32 %v213_v18, %v1133_v2  ;;  %v227_v42 = vadd.f32 %v226_v28, %v185_v60  ;;  %v265_v19 = vadd.f32 %v264_v58, %v1884_v15 }
  0x34   :  { %v290_v6 = vsel %vm142_vm0, %v1885_v9, 0.0  ;;  %v240_v59 = vadd.f32 %v239_v47, %v186_v43  ;;  %v253_v0 = vadd.f32 %v252_v11, %v187_v26  ;;  %v278_v61 = vadd.f32 %v277_v52, %v1125_v17 }
  0x35   :  { %v291_v57 = vsel %vm142_vm0, %v1886_v8, 0.0  ;;  %v215_v20 = vadd.f32 %v214_v53, %v191_v38  ;;  %v228_v35 = vadd.f32 %v227_v42, %v192_v14  ;;  %v266_v39 = vadd.f32 %v265_v19, %v188_v21 }
  0x36   :  { %v292_v48 = vadd.f32 %v291_v57, %v290_v6  ;;  %v241_v27 = vadd.f32 %v240_v59, %v193_v23  ;;  %v254_v51 = vadd.f32 %v253_v0, %v194_v24  ;;  %v279_v18 = vadd.f32 %v278_v61, %v189_v5 }
  0x37   :  { %v293_v58 = vsel %vm142_vm0, %v1129_v63, 0.0  ;;  %v216_v2 = vadd.f32 %v215_v20, %v198_v13  ;;  %v229_v60 = vadd.f32 %v228_v35, %v199_v55  ;;  %v267_v28 = vadd.f32 %v266_v39, %v195_v36 }
  0x38   :  { %v294_v43 = vadd.f32 %v293_v58, %v292_v48  ;;  %v242_v26 = vadd.f32 %v241_v27, %v200_v29  ;;  %v255_v47 = vadd.f32 %v254_v51, %v201_v30  ;;  %v280_v52 = vadd.f32 %v279_v18, %v196_v32 }
  0x39   :  { %v295_v17 = vsel %vm142_vm0, %v1155_v16, 0.0  ;;  %v218_v38 = vadd.f32 %v217_v10, %v216_v2  ;;  %v231_v14 = vadd.f32 %v230_v56, %v229_v60  ;;  %v268_v21 = vadd.f32 %v267_v28, %v202_v31 }
  0x3a   :  { %v296_v11 = vadd.f32 %v295_v17, %v294_v43  ;;  %v244_v23 = vadd.f32 %v243_v34, %v242_v26  ;;  %v257_v24 = vadd.f32 %v256_v4, %v255_v47  ;;  %v281_v5 = vadd.f32 %v280_v52, %v203_v54 }
  0x3b   :  { %v297_v53 = vsel %vm142_vm0, %v197_v3, 0.0  ;;  %v219_v63 = vrot.slane %v218_v38, 4  ;;  %v232_v13 = vrot.slane %v231_v14, 4  ;;  %v270_v55 = vadd.f32 %v269_v7, %v268_v21 }
  0x3c   :  { %v298_v36 = vadd.f32 %v297_v53, %v296_v11  ;;  %v245_v42 = vrot.slane %v244_v23, 4  ;;  %v258_v29 = vrot.slane %v257_v24, 4  ;;  %v283_v51 = vadd.f32 %v282_v33, %v281_v5 }
  0x3d   :  { %v299_v32 = vsel %vm142_vm0, %v1191_v25, 0.0  ;;  %v220_v16 = vadd.f32 %v219_v63, %v218_v38  ;;  %v233_v10 = vadd.f32 %v232_v13, %v231_v14  ;;  %v271_v56 = vrot.slane %v270_v55, 4 }
  0x3e   :  { %v300_v30 = vadd.f32 %v299_v32, %v298_v36  ;;  %v246_v31 = vadd.f32 %v245_v42, %v244_v23  ;;  %v259_v34 = vadd.f32 %v258_v29, %v257_v24  ;;  %v284_v4 = vrot.slane %v283_v51, 4 }
  0x3f   :  { %v301_v3 = vsel %vm154_vm2, %v1207_v62, 0.0  ;;  %v221_v54 = vrot.slane %v220_v16, 2  ;;  %v234_v15 = vrot.slane %v233_v10, 2  ;;  %v272_v7 = vadd.f32 %v271_v56, %v270_v55 }
  0x40   :  { %v302_v19 = vadd.f32 %v301_v3, %v300_v30  ;;  %v247_v9 = vrot.slane %v246_v31, 2  ;;  %v260_v6 = vrot.slane %v259_v34, 2  ;;  %v285_v33 = vadd.f32 %v284_v4, %v283_v51 }
  0x41   :  { %v1248_v59 = vmul.f32 0.020408163, %v1139_v12  ;;  %v222_v25 = vadd.f32 %v221_v54, %v220_v16  ;;  %v235_v0 = vadd.f32 %v234_v15, %v233_v10  ;;  %v273_v61 = vrot.slane %v272_v7, 2 }
  0x42   :  { %v303_v8 = vrot.slane %v302_v19, 4  ;;  %v248_v57 = vadd.f32 %v247_v9, %v246_v31  ;;  %v261_v20 = vadd.f32 %v260_v6, %v259_v34  ;;  %v286_v35 = vrot.slane %v285_v33, 2 }
  0x43   :  { %v1251_v39 = vmul.f32 0.020408163, %v1141_v49  ;;  %v223_v62 = vrot.slane %v222_v25, 1  ;;  %v236_v48 = vrot.slane %v235_v0, 1  ;;  %v274_v27 = vadd.f32 %v273_v61, %v272_v7 }
  0x44   :  { %v304_v18 = vadd.f32 %v303_v8, %v302_v19  ;;  %v249_v58 = vrot.slane %v248_v57, 1  ;;  %v262_v2 = vrot.slane %v261_v20, 1  ;;  %v287_v60 = vadd.f32 %v286_v35, %v285_v33 }
  0x45   :  { %v1254_v12 = vmul.f32 0.020408163, %v1143_v22  ;;  %v224_v28 = vadd.f32 %v223_v62, %v222_v25  ;;  %v237_v43 = vadd.f32 %v236_v48, %v235_v0  ;;  %v275_v26 = vrot.slane %v274_v27, 1 }
  0x46   :  { %v305_v47 = vrot.slane %v304_v18, 2  ;;  %v250_v52 = vadd.f32 %v249_v58, %v248_v57  ;;  %v263_v17 = vadd.f32 %v262_v2, %v261_v20  ;;  %v288_v38 = vrot.slane %v287_v60, 1 }
  0x47   :  { %v1257_v49 = vmul.f32 0.020408163, %v1145_v46  ;;  %v276_v14 = vadd.f32 %v275_v26, %v274_v27  ;;  %v1260_v11 = vmul.f32 0.020408163, %v1159_v40  ;;  %v1263_v23 = vmul.f32 0.020408163, %v1161_v1 }
  0x48   :  { %v306_v21 = vadd.f32 %v305_v47, %v304_v18  ;;  %v289_v22 = vadd.f32 %v288_v38, %v287_v60  ;;  %v1266_v24 = vmul.f32 0.020408163, %v1173_v41  ;;  %v316_v5 = vmul.f32 0.020408163, %v224_v28 }
  0x49   :  { %v317_v53 = vmul.f32 0.020408163, %v237_v43  ;;  %v318_v13 = vmul.f32 0.020408163, %v250_v52  ;;  %v319_v55 = vmul.f32 0.020408163, %v263_v17  ;;  %v323_v46 = vmul.f32 %v1248_v59, %v1248_v59 }
  0x4a   :  { %v307_v63 = vrot.slane %v306_v21, 1  ;;  %v320_v36 = vmul.f32 0.020408163, %v276_v14  ;;  %v321_v42 = vmul.f32 0.020408163, %v289_v22  ;;  %v324_v40 = vmul.f32 %v1251_v39, %v1251_v39 }
  0x4b   :  { %v325_v1 = vmul.f32 %v1254_v12, %v1254_v12  ;;  %v326_v41 = vmul.f32 %v1257_v49, %v1257_v49  ;;  %v327_v51 = vmul.f32 %v1260_v11, %v1260_v11  ;;  %v328_v32 = vmul.f32 %v1263_v23, %v1263_v23 }
  0x4c   :  { %v308_v29 = vadd.f32 %v307_v63, %v306_v21  ;;  %v329_v16 = vmul.f32 %v1266_v24, %v1266_v24  ;;  %v330_v10 = vsub.f32 %v316_v5, %v323_v46  ;;  %v331_v56 = vsub.f32 %v317_v53, %v324_v40  ;;  %v344_v40 = vld [vmem:[%s1765_s1] sm:$0x7f] }
  0x4d   :  { %v332_v30 = vsub.f32 %v318_v13, %v325_v1  ;;  %v333_v34 = vsub.f32 %v319_v55, %v326_v41  ;;  %v334_v4 = vsub.f32 %v320_v36, %v327_v51  ;;  %v335_v3 = vsub.f32 %v321_v42, %v328_v32 }
  0x4e   :  { %v322_v31 = vmul.f32 0.020408163, %v308_v29  ;;  %v337_v54 = vmax.f32 %v330_v10, 0.0  ;;  %v338_v15 = vmax.f32 %v331_v56, 0.0  ;;  %v719_v48 = vmov 1966171168  }
  0x4f   :  { %v339_v7 = vmax.f32 %v332_v30, 0.0  ;;  %v340_v9 = vmax.f32 %v333_v34, 0.0  ;;  %v341_v6 = vmax.f32 %v334_v4, 0.0  ;;  %v342_v33 = vmax.f32 %v335_v3, 0.0 }
  0x50   :  { %v336_v19 = vsub.f32 %v322_v31, %v329_v16  ;;  %v345_v25 = vadd.f32 1e-05, %v337_v54  ;;  %v346_v0 = vadd.f32 1e-05, %v338_v15  ;;  %v370_v27 = vunpack.c.l.s4 %v719_v48  ;;  %v1891_v48 = vld [vmem:[#allocation5_spill] sm:$0xff] }
  0x51   :  { %v347_v61 = vadd.f32 1e-05, %v339_v7  ;;  %v348_v57 = vadd.f32 1e-05, %v340_v9  ;;  %v349_v20 = vadd.f32 1e-05, %v341_v6  ;;  %v372_v18 = vlaneseq }
  0x52   :  { %v343_v8 = vmax.f32 %v336_v19, 0.0  ;;  %705 = vrsqrt.f32 %v345_v25  ;;  %v350_v35 = vadd.f32 1e-05, %v342_v33  ;;  %v371_v58 = vunpack.c.0.s8 %v370_v27  ;;  %v1892_v27 = vld [vmem:[#allocation6_spill] sm:$0xff] }
  0x53   :  { %707 = vrsqrt.f32 %v346_v0  ;;  %v1282_v2 = vshrl.u32 %v372_v18, 7 }
  0x54   :  { %v351_v62 = vadd.f32 1e-05, %v343_v8  ;;  %709 = vrsqrt.f32 %v347_v61  ;;  %v1888_v8 = vld [vmem:[#allocation2_spill] sm:$0xff] }
  0x55   :  { %711 = vrsqrt.f32 %v348_v57  ;;  %v1285_v28 = vsub.s32 %v371_v58, %v1282_v2  ;;  %v420_v1 = vsub.s32 0, %v1282_v2  ;;  %v424_v41 = vsub.s32 1, %v1282_v2 }
  0x56   :  { %713 = vrsqrt.f32 %v349_v20  ;;  %v428_v51 = vsub.s32 2, %v1282_v2  ;;  %v432_v32 = vsub.s32 3, %v1282_v2  ;;  %v436_v16 = vsub.s32 4, %v1282_v2  ;;  %v1889_v20 = vld [vmem:[#allocation3_spill] sm:$0xff] }
  0x57   :  { %715 = vrsqrt.f32 %v350_v35  ;;  %v440_v10 = vsub.s32 5, %v1282_v2  ;;  %v444_v56 = vsub.s32 6, %v1282_v2  ;;  %v1890_v35 = vld [vmem:[#allocation4_spill] sm:$0xff] }
  0x58   :  { %717 = vrsqrt.f32 %v351_v62 }
  0x5c   :  { %v706_v60 = vpop.eup %705 }
  0x5d   :  { %v708_v43 = vpop.eup %707 }
  0x5e   :  { %v710_v26 = vpop.eup %709  ;;  %v366_v47 = vcombine.low %v706_v60, %v708_v43  ;;  %v1893_v60 = vld [vmem:[#allocation7_spill] sm:$0xff] }
  0x5f   :  { %v712_v52 = vpop.eup %711 }
  0x60   :  { %v714_v17 = vpop.eup %713  ;;  %v367_v38 = vcombine.low %v710_v26, %v712_v52  ;;  %v375_v14 = vrot.slane %v366_v47, %v1285_v28  ;;  %v1894_v26 = vld [vmem:[#allocation8_spill] sm:$0xff] }
  0x61   :  { %v716_v21 = vpop.eup %715 }
  0x62   :  { %v718_v22 = vpop.eup %717  ;;  %v368_v5 = vcombine.low %v714_v17, %v716_v21  ;;  %v382_v53 = vrot.slane %v367_v38, %v1285_v28  ;;  %v1895_v17 = vld [vmem:[#allocation9_spill] sm:$0xff] }
  0x63   :  { %v396_v63 = vrot.slane %v718_v22, %v1285_v28  ;;  %v1897_v22 = vld [vmem:[#allocation14_spill] sm:$0xff] }
  0x64   :  { %v389_v13 = vrot.slane %v368_v5, %v1285_v28  ;;  %v397_v55 = vcombine.low %v375_v14, %v382_v53  ;;  %v1896_v14 = vld [vmem:[#allocation10_spill] sm:$0xff] }
  0x66   :  { %v398_v46 = vcombine.low %v389_v13, %v396_v63  ;;  %v405_v36 = vrot.slane %v397_v55, %v1285_v28  ;;  %v1898_v63 = vld [vmem:[#allocation15_spill] sm:$0xff]  ;;  %v1899_v55 = vld [vmem:[#allocation16_spill] sm:$0xff] }
  0x68   :  { %v412_v42 = vrot.slane %v398_v46, %v1285_v28 }
  0x6a   :  { %v413_v29 = vcombine.low %v405_v36, %v412_v42  ;;  %v1900_v36 = vld [vmem:[#allocation18_spill] sm:$0xff] }
  0x6c   :  { %v415_v30 = vmul.f32 %v413_v29, %v344_v40  ;;  %v1901_v29 = vld [vmem:[#allocation19_spill] sm:$0xff] }
  0x6e   :  { %v1305_v31 = vrot.slane %v415_v30, %v420_v1  ;;  %v1309_v34 = vrot.slane %v415_v30, %v424_v41  ;;  %v1313_v4 = vrot.slane %v415_v30, %v428_v51  ;;  %v1317_v3 = vrot.slane %v415_v30, %v432_v32 }
  0x6f   :  { %v1321_v54 = vrot.slane %v415_v30, %v436_v16  ;;  %v1325_v15 = vrot.slane %v415_v30, %v440_v10  ;;  %v1329_v7 = vrot.slane %v415_v30, %v444_v56 }
  0x70   :  { %v453_v19 = vmul.f32 %v1305_v31, %v1248_v59  ;;  %v454_v9 = vmul.f32 %v1309_v34, %v1251_v39  ;;  %v455_v6 = vmul.f32 %v1313_v4, %v1254_v12  ;;  %v456_v33 = vmul.f32 %v1317_v3, %v1257_v49 }
  0x71   :  { %1887 = vst [vmem:[#allocation27_spill] sm:$0xff] %v1321_v54  ;;  %v457_v25 = vmul.f32 %v1321_v54, %v1260_v11  ;;  %v458_v0 = vmul.f32 %v1325_v15, %v1263_v23  ;;  %v459_v61 = vmul.f32 %v1329_v7, %v1266_v24  ;;  %v1347_v59 = vmul.f32 %v1305_v31, %v1888_v8  ;;  %v1905_v8 = vld [vmem:[#allocation23_spill] sm:$0xff] }
  0x72   :  { %v467_v39 = vcombine.low %v453_v19, %v454_v9  ;;  %v468_v57 = vcombine.low %v455_v6, %v456_v33  ;;  %v518_v12 = vmul.f32 %v1309_v34, %v1889_v20  ;;  %v519_v49 = vmul.f32 %v1313_v4, %v1890_v35  ;;  %v1902_v19 = vld [vmem:[#allocation20_spill] sm:$0xff]  ;;  %v1903_v6 = vld [vmem:[#allocation21_spill] sm:$0xff] }
  0x73   :  { %v469_v62 = vcombine.low %v457_v25, %v458_v0  ;;  %v497_v11 = vrot.slane %v459_v61, %v1285_v28  ;;  %v520_v23 = vmul.f32 %v1317_v3, %v1891_v48  ;;  %v521_v24 = vmul.f32 %v1321_v54, %v1892_v27  ;;  %v1904_v0 = vld [vmem:[#allocation22_spill] sm:$0xff] }
  0x74   :  { %v476_v18 = vrot.slane %v467_v39, %v1285_v28  ;;  %v483_v58 = vrot.slane %v468_v57, %v1285_v28  ;;  %v522_v43 = vmul.f32 %v1325_v15, %v1893_v60  ;;  %v523_v47 = vmul.f32 %v1329_v7, %v1894_v26  ;;  %v1906_v57 = vld [vmem:[#allocation24_spill] sm:$0xff]  ;;  %v1908_v27 = vld [vmem:[#allocation26_spill] sm:$0xff] }
  0x75   :  { %v490_v52 = vrot.slane %v469_v62, %v1285_v28  ;;  %v524_v38 = vmul.f32 %v1305_v31, %v1895_v17  ;;  %v525_v21 = vmul.f32 %v1309_v34, %v1896_v14  ;;  %v526_v5 = vmul.f32 %v1313_v4, %v1897_v22  ;;  %v1909_v26 = vld [vmem:[#allocation28_spill] sm:$0xff]  ;;  %v1910_v14 = vld [vmem:[#allocation29_spill] sm:$0xff] }
  0x76   :  { %v498_v53 = vcombine.low %v476_v18, %v483_v58  ;;  %v527_v13 = vmul.f32 %v1317_v3, %v1898_v63  ;;  %v528_v46 = vmul.f32 %v1321_v54, %v1899_v55  ;;  %v1377_v42 = vmul.f32 %v1325_v15, %v1900_v36  ;;  %v416_v58 = vld [vmem:[%s1766_s2] sm:$0x7f]  ;;  %v1912_v63 = vld [vmem:[#allocation31_spill] sm:$0xff]  ;;  %v1913_v55 = vld [vmem:[#allocation32_spill] sm:$0xff] }
  0x77   :  { %v499_v40 = vcombine.low %v490_v52, %v497_v11  ;;  %v530_v30 = vmul.f32 %v1329_v7, %v1901_v29  ;;  %v531_v9 = vmul.f32 %v1305_v31, %v1902_v19  ;;  %v532_v33 = vmul.f32 %v1309_v34, %v1903_v6  ;;  %v1907_v11 = vld [vmem:[#allocation25_spill] sm:$0xff]  ;;  %v1914_v36 = vld [vmem:[#allocation34_spill] sm:$0xff]  ;;  %v1915_v29 = vld [vmem:[#allocation35_spill] sm:$0xff] }
  0x78   :  { %v506_v25 = vrot.slane %v498_v53, %v1285_v28  ;;  %v1388_v61 = vmul.f32 %v1313_v4, %v1904_v0  ;;  %v1392_v39 = vmul.f32 %v1317_v3, %v1905_v8  ;;  %v1396_v20 = vmul.f32 %v1321_v54, %v1906_v57  ;;  %v1911_v53 = vld [vmem:[#allocation30_spill] sm:$0xff]  ;;  %v1916_v6 = vld [vmem:[#allocation36_spill] sm:$0xff] }
  0x79   :  { %v513_v35 = vrot.slane %v499_v40, %v1285_v28  ;;  %v1401_v62 = vmul.f32 %v1325_v15, %v891_v37  ;;  %v1405_v48 = vmul.f32 %v1329_v7, %v1907_v11  ;;  %v1409_v18 = vmul.f32 %v1305_v31, %v1908_v27  ;;  %v1917_v8 = vld [vmem:[#allocation38_spill] sm:$0xff]  ;;  %v1919_v27 = vld [vmem:[#allocation40_spill] sm:$0xff] }
  0x7a   :  { %v1416_v60 = vmul.f32 %v1309_v34, %v909_v44  ;;  %v1420_v37 = vmul.f32 %v1313_v4, %v914_v45  ;;  %v1424_v28 = vmul.f32 %v1317_v3, %v927_v50  ;;  %v1428_v52 = vmul.f32 %v1321_v54, %v1909_v26 }
  0x7b   :  { %v514_v17 = vcombine.low %v506_v25, %v513_v35  ;;  %v1432_v22 = vmul.f32 %v1325_v15, %v1910_v14  ;;  %v1436_v44 = vmul.f32 %v1329_v7, %v1911_v53  ;;  %v1440_v45 = vmul.f32 %v1305_v31, %v1912_v63  ;;  %v1918_v35 = vld [vmem:[#allocation39_spill] sm:$0xff]  ;;  %v1920_v14 = vld [vmem:[#allocation41_spill] sm:$0xff]  ;;  %v1921_v63 = vld [vmem:[#allocation42_spill] sm:$0xff] }
  0x7c   :  { %v1444_v50 = vmul.f32 %v1309_v34, %v1913_v55  ;;  %v1448_v40 = vmul.f32 %v1313_v4, %v1914_v36  ;;  %v1452_v19 = vmul.f32 %v1317_v3, %v1915_v29  ;;  %v1456_v25 = vmul.f32 %v1321_v54, %v1916_v6  ;;  %v1923_v36 = vld [vmem:[#allocation45_spill] sm:$0xff] }
  0x7d   :  { %v516_v0 = vsub.f32 %v416_v58, %v514_v17  ;;  %v1460_v57 = vmul.f32 %v1325_v15, %v1917_v8  ;;  %v1464_v11 = vmul.f32 %v1329_v7, %v1918_v35  ;;  %v1468_v26 = vmul.f32 %v1305_v31, %v1919_v27  ;;  %v1922_v58 = vld [vmem:[#allocation43_spill] sm:$0xff] }
  0x7e   :  { %v1472_v53 = vmul.f32 %v1309_v34, %v1920_v14  ;;  %v1476_v55 = vmul.f32 %v1313_v4, %v1921_v63  ;;  %v1480_v17 = vmul.f32 %v1317_v3, %v1922_v58  ;;  %v1484_v29 = vmul.f32 %v1321_v54, %v1923_v36  ;;  %v1924_v63 = vld [vmem:[#allocation46_spill] sm:$0xff] }
  0x7f   :  { %v1488_v6 = vrot.slane %v516_v0, %v420_v1  ;;  %v1492_v8 = vrot.slane %v516_v0, %v424_v41  ;;  %v1496_v35 = vrot.slane %v516_v0, %v428_v51  ;;  %v1500_v27 = vrot.slane %v516_v0, %v432_v32 }
  0x80   :  { %v1504_v14 = vrot.slane %v516_v0, %v436_v16  ;;  %v1508_v1 = vrot.slane %v516_v0, %v440_v10  ;;  %v1512_v41 = vrot.slane %v516_v0, %v444_v56  ;;  %v1516_v51 = vmul.f32 %v1325_v15, %v1924_v63  ;;  %v1931_v63 = vld [vmem:[#allocation27_spill] sm:$0xff] }
  0x81   :  { %v602_v32 = vadd.f32 %v1488_v6, %v1347_v59  ;;  %v603_v58 = vadd.f32 %v1492_v8, %v518_v12  ;;  %v604_v16 = vadd.f32 %v1496_v35, %v519_v49  ;;  %v605_v36 = vadd.f32 %v1500_v27, %v520_v23 }
  0x82   :  { %v606_v10 = vadd.f32 %v1504_v14, %v521_v24  ;;  %v607_v54 = vadd.f32 %v1508_v1, %v522_v43  ;;  %v608_v2 = vadd.f32 %v1512_v41, %v523_v47  ;;  %v609_v56 = vadd.f32 %v1488_v6, %v524_v38 }
  0x83   :  { %651 = vst [vmem:[%s1767_s3] sm:$0xff] %v602_v32  ;;  %652 = vst [vmem:[%s1767_s3 + $0x8] sm:$0xff] %v603_v58  ;;  %v610_v59 = vadd.f32 %v1492_v8, %v525_v21  ;;  %v611_v12 = vadd.f32 %v1496_v35, %v526_v5  ;;  %v612_v49 = vadd.f32 %v1500_v27, %v527_v13  ;;  %v1932_v32 = vld [vmem:[#allocation55_spill] sm:$0xff] }
  0x84   :  { %653 = vst [vmem:[%s1767_s3 + $0x10] sm:$0xff] %v604_v16  ;;  %654 = vst [vmem:[%s1767_s3 + $0x18] sm:$0xff] %v605_v36  ;;  %v613_v23 = vadd.f32 %v1504_v14, %v528_v46  ;;  %v614_v24 = vadd.f32 %v1508_v1, %v1377_v42  ;;  %v615_v43 = vadd.f32 %v1512_v41, %v530_v30 }
  0x85   :  { %655 = vst [vmem:[%s1767_s3 + $0x20] sm:$0xff] %v606_v10  ;;  %656 = vst [vmem:[%s1767_s3 + $0x28] sm:$0xff] %v607_v54  ;;  %v616_v47 = vadd.f32 %v1488_v6, %v531_v9  ;;  %v617_v38 = vadd.f32 %v1492_v8, %v532_v33  ;;  %v618_v54 = vadd.f32 %v1496_v35, %v1388_v61 }
  0x86   :  { %657 = vst.msk [vmem:[%s1767_s3 + $0x30] sm:$0xff] %vm142_vm0, %v608_v2  ;;  %658 = vst [vmem:[%s1767_s3 + $0x38] sm:$0xff] %v609_v56  ;;  %v619_v21 = vadd.f32 %v1500_v27, %v1392_v39  ;;  %v620_v5 = vadd.f32 %v1504_v14, %v1396_v20  ;;  %v621_v13 = vadd.f32 %v1508_v1, %v1401_v62 }
  0x87   :  { %659 = vst [vmem:[%s1767_s3 + $0x40] sm:$0xff] %v610_v59  ;;  %660 = vst [vmem:[%s1767_s3 + $0x48] sm:$0xff] %v611_v12  ;;  %v622_v46 = vadd.f32 %v1512_v41, %v1405_v48  ;;  %v623_v42 = vadd.f32 %v1488_v6, %v1409_v18  ;;  %v624_v30 = vadd.f32 %v1492_v8, %v1416_v60 }
  0x88   :  { %661 = vst [vmem:[%s1767_s3 + $0x50] sm:$0xff] %v612_v49  ;;  %662 = vst [vmem:[%s1767_s3 + $0x58] sm:$0xff] %v613_v23  ;;  %v625_v9 = vadd.f32 %v1496_v35, %v1420_v37  ;;  %v626_v33 = vadd.f32 %v1500_v27, %v1424_v28  ;;  %v627_v61 = vadd.f32 %v1504_v14, %v1428_v52 }
  0x89   :  { %663 = vst [vmem:[%s1767_s3 + $0x60] sm:$0xff] %v614_v24  ;;  %664 = vst.msk [vmem:[%s1767_s3 + $0x68] sm:$0xff] %vm142_vm0, %v615_v43  ;;  %v628_v39 = vadd.f32 %v1508_v1, %v1432_v22  ;;  %v629_v20 = vadd.f32 %v1512_v41, %v1436_v44  ;;  %v630_v62 = vadd.f32 %v1488_v6, %v1440_v45 }
  0x8a   :  { %665 = vst [vmem:[%s1767_s3 + $0x70] sm:$0xff] %v616_v47  ;;  %666 = vst [vmem:[%s1767_s3 + $0x78] sm:$0xff] %v617_v38  ;;  %v631_v48 = vadd.f32 %v1492_v8, %v1444_v50  ;;  %v632_v18 = vadd.f32 %v1496_v35, %v1448_v40  ;;  %v633_v60 = vadd.f32 %v1500_v27, %v1452_v19 }
  0x8b   :  { %667 = vst [vmem:[%s1767_s3 + $0x80] sm:$0xff] %v618_v54  ;;  %668 = vst [vmem:[%s1767_s3 + $0x88] sm:$0xff] %v619_v21  ;;  %v634_v37 = vadd.f32 %v1504_v14, %v1456_v25  ;;  %v635_v28 = vadd.f32 %v1508_v1, %v1460_v57  ;;  %v636_v52 = vadd.f32 %v1512_v41, %v1464_v11  ;;  %v1925_v25 = vld [vmem:[#allocation47_spill] sm:$0xff]  ;;  %v1926_v57 = vld [vmem:[#allocation48_spill] sm:$0xff] }
  0x8c   :  { %669 = vst [vmem:[%s1767_s3 + $0x90] sm:$0xff] %v620_v5  ;;  %670 = vst [vmem:[%s1767_s3 + $0x98] sm:$0xff] %v621_v13  ;;  %v637_v22 = vadd.f32 %v1488_v6, %v1468_v26  ;;  %v638_v44 = vadd.f32 %v1492_v8, %v1472_v53  ;;  %v639_v45 = vadd.f32 %v1496_v35, %v1476_v55  ;;  %v1927_v26 = vld [vmem:[#allocation49_spill] sm:$0xff] }
  0x8d   :  { %671 = vst.msk [vmem:[%s1767_s3 + $0xa0] sm:$0xff] %vm142_vm0, %v622_v46  ;;  %672 = vst [vmem:[%s1767_s3 + $0xa8] sm:$0xff] %v623_v42  ;;  %v640_v50 = vadd.f32 %v1500_v27, %v1480_v17  ;;  %v641_v40 = vadd.f32 %v1504_v14, %v1484_v29  ;;  %v642_v19 = vadd.f32 %v1508_v1, %v1516_v51  ;;  %v1930_v29 = vld [vmem:[#allocation54_spill] sm:$0xff] }
  0x8e   :  { %673 = vst [vmem:[%s1767_s3 + $0xb0] sm:$0xff] %v624_v30  ;;  %674 = vst [vmem:[%s1767_s3 + $0xb8] sm:$0xff] %v625_v9  ;;  %v558_v0 = vmul.f32 %v1329_v7, %v1925_v25  ;;  %v559_v11 = vmul.f32 %v1305_v31, %v1926_v57  ;;  %v560_v53 = vmul.f32 %v1309_v34, %v1927_v26  ;;  %v1928_v31 = vld [vmem:[#allocation50_spill] sm:$0xff]  ;;  %v1929_v34 = vld [vmem:[#allocation53_spill] sm:$0xff] }
  0x8f   :  { %675 = vst [vmem:[%s1767_s3 + $0xc0] sm:$0xff] %v626_v33  ;;  %676 = vst [vmem:[%s1767_s3 + $0xc8] sm:$0xff] %v627_v61  ;;  %v561_v55 = vmul.f32 %v1313_v4, %v1928_v31  ;;  %v562_v17 = vmul.f32 %v1317_v3, %v1929_v34  ;;  %v563_v51 = vmul.f32 %v1931_v63, %v1930_v29  ;;  %v1933_v4 = vld [vmem:[#allocation60_spill] sm:$0xff] }
  0x90   :  { %677 = vst [vmem:[%s1767_s3 + $0xd0] sm:$0xff] %v628_v39  ;;  %678 = vst.msk [vmem:[%s1767_s3 + $0xd8] sm:$0xff] %vm142_vm0, %v629_v20  ;;  %v564_v58 = vmul.f32 %v1325_v15, %v1932_v32  ;;  %v643_v16 = vadd.f32 %v1512_v41, %v558_v0  ;;  %v644_v36 = vadd.f32 %v1488_v6, %v559_v11 }
  0x91   :  { %679 = vst [vmem:[%s1767_s3 + $0xe0] sm:$0xff] %v630_v62  ;;  %680 = vst [vmem:[%s1767_s3 + $0xe8] sm:$0xff] %v631_v48  ;;  %v645_v10 = vadd.f32 %v1492_v8, %v560_v53  ;;  %v565_v2 = vmul.f32 %v1329_v7, %v1933_v4  ;;  %v646_v3 = vadd.f32 %v1496_v35, %v561_v55 }
  0x92   :  { %681 = vst [vmem:[%s1767_s3 + $0xf0] sm:$0xff] %v632_v18  ;;  %682 = vst [vmem:[%s1767_s3 + $0xf8] sm:$0xff] %v633_v60  ;;  %v647_v56 = vadd.f32 %v1500_v27, %v562_v17  ;;  %v648_v59 = vadd.f32 %v1504_v14, %v563_v51  ;;  %v649_v15 = vadd.f32 %v1508_v1, %v564_v58 }
  0x93   :  { %683 = vst [vmem:[%s1767_s3 + $0x100] sm:$0xff] %v634_v37  ;;  %684 = vst [vmem:[%s1767_s3 + $0x108] sm:$0xff] %v635_v28  ;;  %v650_v7 = vadd.f32 %v1512_v41, %v565_v2 }
  0x94   :  { %685 = vst.msk [vmem:[%s1767_s3 + $0x110] sm:$0xff] %vm142_vm0, %v636_v52  ;;  %686 = vst [vmem:[%s1767_s3 + $0x118] sm:$0xff] %v637_v22 }
  0x95   :  { %687 = vst [vmem:[%s1767_s3 + $0x120] sm:$0xff] %v638_v44  ;;  %688 = vst [vmem:[%s1767_s3 + $0x128] sm:$0xff] %v639_v45 }
  0x96   :  { %689 = vst [vmem:[%s1767_s3 + $0x130] sm:$0xff] %v640_v50  ;;  %690 = vst [vmem:[%s1767_s3 + $0x138] sm:$0xff] %v641_v40 }
  0x97   :  { %691 = vst [vmem:[%s1767_s3 + $0x140] sm:$0xff] %v642_v19  ;;  %692 = vst.msk [vmem:[%s1767_s3 + $0x148] sm:$0xff] %vm142_vm0, %v643_v16 }
  0x98   :  { %693 = vst [vmem:[%s1767_s3 + $0x150] sm:$0x1] %v644_v36  ;;  %694 = vst [vmem:[%s1767_s3 + $0x158] sm:$0x1] %v645_v10 }
  0x99   :  { %695 = vst [vmem:[%s1767_s3 + $0x160] sm:$0x1] %v646_v3  ;;  %696 = vst [vmem:[%s1767_s3 + $0x168] sm:$0x1] %v647_v56 }
  0x9a   :  { %697 = vst [vmem:[%s1767_s3 + $0x170] sm:$0x1] %v648_v59  ;;  %698 = vst [vmem:[%s1767_s3 + $0x178] sm:$0x1] %v649_v15 }
  0x9b   :  { %699 = vst.msk [vmem:[%s1767_s3 + $0x180] sm:$0x1] %vm154_vm2, %v650_v7 }

</bundles_post_ra>
